<compile_context>
chip_gen: v6e
topology: v6e:2x2x1
jax: 0.10.0
libtpu: 0.0.40
codegen_flags: <defaults>
</compile_context>

<pallas_src>
import functools

import jax
import jax.numpy as jnp
from jax.experimental import pallas as pl
from jax.experimental.pallas import tpu as pltpu


def _round_up(x, m):
    return ((x + m - 1) // m) * m


def _bert_self_output_kernel(x_ref, emb_ref, w_ref, b_ref, gamma_ref, beta_ref,
                             o_ref, *, eps, h_real, matmul_dtype):
    # x_ref, emb_ref, o_ref : (TM, Hp)  row tiles (Hp = hidden padded to 128)
    # w_ref                 : (Hp, Hp)  dense weight, (in, out) layout
    # b_ref / gamma_ref / beta_ref : (1, Hp)
    x = x_ref[...]
    if matmul_dtype is not None and x.dtype != matmul_dtype:
        x = x.astype(matmul_dtype)
    w = w_ref[...]

    # y[m, o] = sum_i x[m, i] * w[i, o]  (plain contraction, f32 accumulation)
    y = jnp.dot(x, w, preferred_element_type=jnp.float32)

    y = y + b_ref[...].astype(jnp.float32)
    # Dropout (eval mode) = identity; residual add.
    y = y + emb_ref[...].astype(jnp.float32)

    hp = y.shape[-1]
    inv_h = 1.0 / float(h_real)
    # Padded hidden columns of y are exactly 0 (w, b, emb zero-padded), so the
    # mean needs no mask.
    mean = jnp.sum(y, axis=-1, keepdims=True) * inv_h
    centered = y - mean
    if h_real != hp:
        # Padded columns of `centered` would be -mean: mask them (single select).
        col = jax.lax.broadcasted_iota(jnp.int32, (1, hp), 1)
        centered = jnp.where(col < h_real, centered, 0.0)

    var = jnp.sum(centered * centered, axis=-1, keepdims=True) * inv_h
    inv = jax.lax.rsqrt(var + eps)
    out = (centered * inv * gamma_ref[...].astype(jnp.float32)
           + beta_ref[...].astype(jnp.float32))

    o_ref[...] = out.astype(o_ref.dtype)


def bert_self_output(emb_rich, emb, w, b, gamma, beta, *, eps=1e-12,
                     tile_m=512, matmul_dtype=None):
    """emb_rich, emb: [B, S, H]; w: [H, H] (PyTorch layout: out x in);
    b, gamma, beta: [H]. matmul_dtype: optional dtype to feed the MXU (e.g.
    jnp.bfloat16) while keeping f32 accumulation and f32 LN epilogue."""
    B, S, H = emb_rich.shape
    M = B * S
    dtype = emb_rich.dtype
    itemsize = jnp.dtype(dtype).itemsize

    # Transpose the weight once to (in, out); optionally cast once for the MXU.
    w_t = jnp.asarray(w).T
    if matmul_dtype is not None:
        w_t = w_t.astype(matmul_dtype)
    w_itemsize = jnp.dtype(w_t.dtype).itemsize

    # Lane-dense hidden axis; sublane-pack-aligned row tile.
    Hp = _round_up(H, 128)
    sub = max(8, 32 // itemsize)            # f32 -> 8, bf16 -> 16, int8 -> 32
    tile_m = max(sub, min(_round_up(tile_m, sub), _round_up(M, sub)))
    Mp = _round_up(M, tile_m)

    pad_h = Hp - H
    pad_m = Mp - M

    x2 = emb_rich.reshape(M, H)
    e2 = emb.reshape(M, H)
    if pad_h or pad_m:
        # TODO(synk): ragged-M could use a masked final tile instead of padding.
        x2 = jnp.pad(x2, ((0, pad_m), (0, pad_h)))
        e2 = jnp.pad(e2, ((0, pad_m), (0, pad_h)))
    wp = jnp.pad(w_t, ((0, pad_h), (0, pad_h))) if pad_h else w_t
    bp = (jnp.pad(b, (0, pad_h)) if pad_h else b).reshape(1, Hp)
    gp = (jnp.pad(gamma, (0, pad_h)) if pad_h else gamma).reshape(1, Hp)
    bep = (jnp.pad(beta, (0, pad_h)) if pad_h else beta).reshape(1, Hp)

    grid = (Mp // tile_m,)

    # VMEM budget: double-buffered streaming tiles (x, emb, out) + resident
    # single-buffered weight + param vectors + f32 epilogue headroom.
    tile_bytes = tile_m * Hp * itemsize
    vmem_needed = (2 * 3 * tile_bytes
                   + Hp * Hp * w_itemsize
                   + 3 * Hp * itemsize
                   + 4 * tile_m * Hp * 4)
    try:
        vmem_cap = int(pltpu.get_tpu_info().vmem_capacity_bytes)
    except Exception:
        vmem_cap = 64 * 1024 * 1024
    # ~3/4 of physical VMEM: ~96 MiB on v5e/v6e (128 MiB), ~48 MiB on v7x (64 MiB).
    vmem_limit = int(min(max(2 * vmem_needed, 16 * 1024 * 1024),
                         (vmem_cap * 3) // 4))

    cost = pl.CostEstimate(
        flops=int(2 * Mp * Hp * Hp),
        transcendentals=int(Mp),                    # rsqrt per row
        bytes_accessed=int(itemsize * 3 * Mp * Hp + w_itemsize * Hp * Hp
                           + itemsize * 3 * Hp),
    )

    kernel = functools.partial(_bert_self_output_kernel, eps=eps, h_real=H,
                               matmul_dtype=matmul_dtype)

    def _make_call(single_buffer_resident):
        # Constant-index_map operands don't benefit from double-buffering.
        const_kw = ({"pipeline_mode": pl.Buffered(1)}
                    if single_buffer_resident else {})
        return pl.pallas_call(
            kernel,
            out_shape=jax.ShapeDtypeStruct((Mp, Hp), dtype),
            grid_spec=pltpu.PrefetchScalarGridSpec(
                num_scalar_prefetch=0,
                grid=grid,
                in_specs=[
                    pl.BlockSpec((tile_m, Hp), lambda i: (i, 0)),   # emb_rich
                    pl.BlockSpec((tile_m, Hp), lambda i: (i, 0)),   # emb
                    pl.BlockSpec((Hp, Hp), lambda i: (0, 0), **const_kw),  # W
                    pl.BlockSpec((1, Hp), lambda i: (0, 0), **const_kw),   # b
                    pl.BlockSpec((1, Hp), lambda i: (0, 0), **const_kw),   # gamma
                    pl.BlockSpec((1, Hp), lambda i: (0, 0), **const_kw),   # beta
                ],
                out_specs=pl.BlockSpec((tile_m, Hp), lambda i: (i, 0)),
            ),
            compiler_params=pltpu.CompilerParams(
                dimension_semantics=("parallel",),
                vmem_limit_bytes=vmem_limit),
            cost_estimate=cost,
        )

    try:
        out = jax.block_until_ready(_make_call(True)(x2, e2, wp, bp, gp, bep))
    except Exception:
        # Fallback if this Pallas build rejects single-buffered pipeline_mode.
        out = jax.block_until_ready(_make_call(False)(x2, e2, wp, bp, gp, bep))

    if pad_h or pad_m:
        out = out[:M, :H]
    return out.reshape(B, S, H)


def _reference(emb_rich, emb, w, b, gamma, beta, eps=1e-12):
    y = jnp.einsum("bsh,oh->bso", emb_rich, w) + b
    y = y + emb
    mean = jnp.mean(y, axis=-1, keepdims=True)
    var = jnp.mean((y - mean) ** 2, axis=-1, keepdims=True)
    return (y - mean) * jax.lax.rsqrt(var + eps) * gamma + beta


if __name__ == "__main__":
    eps = 1e-12
    key = jax.random.PRNGKey(0)
    k1, k2, k3, k4 = jax.random.split(key, 4)

    # Small BERT-ish config: batch=2, seq=8, hidden=32 (exercises padded path).
    B, S, H = 2, 8, 32
    emb_rich = jax.random.normal(k1, (B, S, H), dtype=jnp.float32)
    emb = jax.random.normal(k2, (B, S, H), dtype=jnp.float32)
    w = jax.random.normal(k3, (H, H), dtype=jnp.float32) * 0.02   # (out, in)
    b = jax.random.normal(k4, (H,), dtype=jnp.float32) * 0.02
    gamma = jnp.ones((H,), dtype=jnp.float32)
    beta = jnp.zeros((H,), dtype=jnp.float32)

    out = bert_self_output(emb_rich, emb, w, b, gamma, beta, eps=eps)
    out = jax.block_until_ready(out)
    ref = _reference(emb_rich, emb, w, b, gamma, beta, eps=eps)
    assert out.shape == (B, S, H)
    # Tolerance accounts for TPU default matmul precision on f32 operands.
    assert jnp.allclose(out, ref, atol=5e-3, rtol=5e-3), "f32 path mismatch"

    # Lane-aligned hidden (no-pad fast path) + bf16 MXU feed.
    H2 = 128
    k5, k6, k7, k8 = jax.random.split(jax.random.PRNGKey(1), 4)
    emb_rich2 = jax.random.normal(k5, (B, S, H2), dtype=jnp.float32)
    emb2 = jax.random.normal(k6, (B, S, H2), dtype=jnp.float32)
    w2 = jax.random.normal(k7, (H2, H2), dtype=jnp.float32) * 0.02
    b2 = jax.random.normal(k8, (H2,), dtype=jnp.float32) * 0.02
    gamma2 = jnp.ones((H2,), dtype=jnp.float32)
    beta2 = jnp.zeros((H2,), dtype=jnp.float32)

    out2 = bert_self_output(emb_rich2, emb2, w2, b2, gamma2, beta2, eps=eps,
                            matmul_dtype=jnp.bfloat16)
    out2 = jax.block_until_ready(out2)
    ref2 = _reference(emb_rich2, emb2, w2, b2, gamma2, beta2, eps=eps)
    assert out2.shape == (B, S, H2)
    assert jnp.allclose(out2, ref2, atol=2e-2, rtol=2e-2), "bf16 path mismatch"

    print("KERNEL_OK")
</pallas_src>

<mosaic_0001>
module attributes {stable_mosaic.version = 11 : i64} {
  func.func @_bert_self_output_kernel(%arg0: i32, %arg1: memref<16x128xf32, #tpu.memory_space<vmem>>, %arg2: memref<16x128xf32, #tpu.memory_space<vmem>>, %arg3: memref<128x128xf32, #tpu.memory_space<vmem>>, %arg4: memref<1x128xf32, #tpu.memory_space<vmem>>, %arg5: memref<1x128xf32, #tpu.memory_space<vmem>>, %arg6: memref<1x128xf32, #tpu.memory_space<vmem>>, %arg7: memref<16x128xf32, #tpu.memory_space<vmem>>) attributes {dimension_semantics = [#tpu.dimension_semantics<parallel>], iteration_bounds = array<i64: 1>, scalar_prefetch = 0 : i64, scratch_operands = 0 : i64, tpu.core_type = #tpu.core_type<tc>, window_params = [{transform_indices = @transform_0, window_bounds = array<i64: 16, 128>}, {transform_indices = @transform_1, window_bounds = array<i64: 16, 128>}, {pipeline_mode = #tpu.pipeline_mode<synchronous>, transform_indices = @transform_2, window_bounds = array<i64: 128, 128>}, {pipeline_mode = #tpu.pipeline_mode<synchronous>, transform_indices = @transform_3, window_bounds = array<i64: 1, 128>}, {pipeline_mode = #tpu.pipeline_mode<synchronous>, transform_indices = @transform_4, window_bounds = array<i64: 1, 128>}, {pipeline_mode = #tpu.pipeline_mode<synchronous>, transform_indices = @transform_5, window_bounds = array<i64: 1, 128>}, {transform_indices = @transform_6, window_bounds = array<i64: 16, 128>}]} {
    %c0 = arith.constant 0 : index
    %c0_0 = arith.constant 0 : index
    %0 = vector.load %arg1[%c0, %c0_0] : memref<16x128xf32, #tpu.memory_space<vmem>>, vector<16x128xf32>
    %c0_1 = arith.constant 0 : index
    %c0_2 = arith.constant 0 : index
    %1 = vector.load %arg3[%c0_1, %c0_2] : memref<128x128xf32, #tpu.memory_space<vmem>>, vector<128x128xf32>
    %cst = arith.constant dense<0.000000e+00> : vector<16x128xf32>
    %2 = tpu.matmul %0, %1, %cst {dimension_numbers = #tpu.dot_dimension_numbers<[1], [0], [0], [1], [0, 0, 1, 1], [], []>} : vector<16x128xf32>, vector<128x128xf32>, vector<16x128xf32> -> vector<16x128xf32>
    %c0_3 = arith.constant 0 : index
    %c0_4 = arith.constant 0 : index
    %3 = vector.load %arg4[%c0_3, %c0_4] : memref<1x128xf32, #tpu.memory_space<vmem>>, vector<1x128xf32>
    %4 = vector.broadcast %3 : vector<1x128xf32> to vector<16x128xf32>
    %5 = arith.addf %2, %4 : vector<16x128xf32>
    %c0_5 = arith.constant 0 : index
    %c0_6 = arith.constant 0 : index
    %6 = vector.load %arg2[%c0_5, %c0_6] : memref<16x128xf32, #tpu.memory_space<vmem>>, vector<16x128xf32>
    %7 = arith.addf %5, %6 : vector<16x128xf32>
    %cst_7 = arith.constant dense<0.000000e+00> : vector<16xf32>
    %8 = vector.multi_reduction <add>, %7, %cst_7 [1] : vector<16x128xf32> to vector<16xf32>
    %9 = vector.shape_cast %8 : vector<16xf32> to vector<16x1xf32>
    %cst_8 = arith.constant 3.125000e-02 : f32
    %10 = vector.broadcast %cst_8 : f32 to vector<16x1xf32>
    %11 = arith.mulf %9, %10 : vector<16x1xf32>
    %12 = vector.broadcast %11 : vector<16x1xf32> to vector<16x128xf32>
    %13 = arith.subf %7, %12 : vector<16x128xf32>
    %14 = tpu.iota {dimensions = array<i32: 1>} : vector<1x128xi32>
    %c32_i32 = arith.constant 32 : i32
    %15 = vector.broadcast %c32_i32 : i32 to vector<1x128xi32>
    %16 = arith.cmpi slt, %14, %15 : vector<1x128xi32>
    %cst_9 = arith.constant 0.000000e+00 : f32
    %17 = vector.shape_cast %16 : vector<1x128xi1> to vector<1x128xi1>
    %18 = vector.broadcast %17 : vector<1x128xi1> to vector<16x128xi1>
    %19 = vector.broadcast %cst_9 : f32 to vector<16x128xf32>
    %20 = arith.select %18, %13, %19 : vector<16x128xi1>, vector<16x128xf32>
    %21 = arith.mulf %20, %20 : vector<16x128xf32>
    %cst_10 = arith.constant dense<0.000000e+00> : vector<16xf32>
    %22 = vector.multi_reduction <add>, %21, %cst_10 [1] : vector<16x128xf32> to vector<16xf32>
    %23 = vector.shape_cast %22 : vector<16xf32> to vector<16x1xf32>
    %cst_11 = arith.constant 3.125000e-02 : f32
    %24 = vector.broadcast %cst_11 : f32 to vector<16x1xf32>
    %25 = arith.mulf %23, %24 : vector<16x1xf32>
    %cst_12 = arith.constant 9.99999996E-13 : f32
    %26 = vector.broadcast %cst_12 : f32 to vector<16x1xf32>
    %27 = arith.addf %25, %26 : vector<16x1xf32>
    %28 = math.rsqrt %27 : vector<16x1xf32>
    %29 = vector.broadcast %28 : vector<16x1xf32> to vector<16x128xf32>
    %30 = arith.mulf %20, %29 : vector<16x128xf32>
    %c0_13 = arith.constant 0 : index
    %c0_14 = arith.constant 0 : index
    %31 = vector.load %arg5[%c0_13, %c0_14] : memref<1x128xf32, #tpu.memory_space<vmem>>, vector<1x128xf32>
    %32 = vector.broadcast %31 : vector<1x128xf32> to vector<16x128xf32>
    %33 = arith.mulf %30, %32 : vector<16x128xf32>
    %c0_15 = arith.constant 0 : index
    %c0_16 = arith.constant 0 : index
    %34 = vector.load %arg6[%c0_15, %c0_16] : memref<1x128xf32, #tpu.memory_space<vmem>>, vector<1x128xf32>
    %35 = vector.broadcast %34 : vector<1x128xf32> to vector<16x128xf32>
    %36 = arith.addf %33, %35 : vector<16x128xf32>
    %c0_17 = arith.constant 0 : index
    %c0_18 = arith.constant 0 : index
    %37 = vector.load %arg7[%c0_17, %c0_18] : memref<16x128xf32, #tpu.memory_space<vmem>>, vector<16x128xf32>
    tpu.vector_store %arg7[%c0_17, %c0_18], %36 {strides = array<i32>} : memref<16x128xf32, #tpu.memory_space<vmem>>, vector<16x128xf32>,
    return
  }
  func.func @transform_0(%arg0: i32) -> (i32, i32) {
    %c0_i32 = arith.constant 0 : i32
    %c0_i32_0 = arith.constant 0 : i32
    return %arg0, %c0_i32 : i32, i32
  }
  func.func @transform_1(%arg0: i32) -> (i32, i32) {
    %c0_i32 = arith.constant 0 : i32
    %c0_i32_0 = arith.constant 0 : i32
    return %arg0, %c0_i32 : i32, i32
  }
  func.func @transform_2(%arg0: i32) -> (i32, i32) {
    %c0_i32 = arith.constant 0 : i32
    %c0_i32_0 = arith.constant 0 : i32
    %c0_i32_1 = arith.constant 0 : i32
    return %c0_i32, %c0_i32_0 : i32, i32
  }
  func.func @transform_3(%arg0: i32) -> (i32, i32) {
    %c0_i32 = arith.constant 0 : i32
    %c0_i32_0 = arith.constant 0 : i32
    %c0_i32_1 = arith.constant 0 : i32
    return %c0_i32, %c0_i32_0 : i32, i32
  }
  func.func @transform_4(%arg0: i32) -> (i32, i32) {
    %c0_i32 = arith.constant 0 : i32
    %c0_i32_0 = arith.constant 0 : i32
    %c0_i32_1 = arith.constant 0 : i32
    return %c0_i32, %c0_i32_0 : i32, i32
  }
  func.func @transform_5(%arg0: i32) -> (i32, i32) {
    %c0_i32 = arith.constant 0 : i32
    %c0_i32_0 = arith.constant 0 : i32
    %c0_i32_1 = arith.constant 0 : i32
    return %c0_i32, %c0_i32_0 : i32, i32
  }
  func.func @transform_6(%arg0: i32) -> (i32, i32) {
    %c0_i32 = arith.constant 0 : i32
    %c0_i32_0 = arith.constant 0 : i32
    return %arg0, %c0_i32 : i32, i32
  }
}

module attributes {stable_mosaic.version = 11 : i64} {
  func.func @_bert_self_output_kernel(%arg0: i32, %arg1: memref<16x128xf32, #tpu.memory_space<vmem>>, %arg2: memref<16x128xf32, #tpu.memory_space<vmem>>, %arg3: memref<128x128xf32, #tpu.memory_space<vmem>>, %arg4: memref<1x128xf32, #tpu.memory_space<vmem>>, %arg5: memref<1x128xf32, #tpu.memory_space<vmem>>, %arg6: memref<1x128xf32, #tpu.memory_space<vmem>>, %arg7: memref<16x128xf32, #tpu.memory_space<vmem>>) attributes {dimension_semantics = [#tpu.dimension_semantics<parallel>], iteration_bounds = array<i64: 1>, scalar_prefetch = 0 : i64, scratch_operands = 0 : i64, tpu.core_type = #tpu.core_type<tc>, window_params = [{transform_indices = @transform_0, window_bounds = array<i64: 16, 128>}, {transform_indices = @transform_1, window_bounds = array<i64: 16, 128>}, {pipeline_mode = #tpu.pipeline_mode<synchronous>, transform_indices = @transform_2, window_bounds = array<i64: 128, 128>}, {pipeline_mode = #tpu.pipeline_mode<synchronous>, transform_indices = @transform_3, window_bounds = array<i64: 1, 128>}, {pipeline_mode = #tpu.pipeline_mode<synchronous>, transform_indices = @transform_4, window_bounds = array<i64: 1, 128>}, {pipeline_mode = #tpu.pipeline_mode<synchronous>, transform_indices = @transform_5, window_bounds = array<i64: 1, 128>}, {transform_indices = @transform_6, window_bounds = array<i64: 16, 128>}]} {
    %c0 = arith.constant 0 : index
    %c0_0 = arith.constant 0 : index
    %0 = vector.load %arg1[%c0, %c0_0] : memref<16x128xf32, #tpu.memory_space<vmem>>, vector<16x128xf32>
    %c0_1 = arith.constant 0 : index
    %c0_2 = arith.constant 0 : index
    %1 = vector.load %arg3[%c0_1, %c0_2] : memref<128x128xf32, #tpu.memory_space<vmem>>, vector<128x128xf32>
    %cst = arith.constant dense<0.000000e+00> : vector<16x128xf32>
    %2 = tpu.matmul %0, %1, %cst {dimension_numbers = #tpu.dot_dimension_numbers<[1], [0], [0], [1], [0, 0, 1, 1], [], []>} : vector<16x128xf32>, vector<128x128xf32>, vector<16x128xf32> -> vector<16x128xf32>
    %c0_3 = arith.constant 0 : index
    %c0_4 = arith.constant 0 : index
    %3 = vector.load %arg4[%c0_3, %c0_4] : memref<1x128xf32, #tpu.memory_space<vmem>>, vector<1x128xf32>
    %4 = vector.broadcast %3 : vector<1x128xf32> to vector<16x128xf32>
    %5 = arith.addf %2, %4 : vector<16x128xf32>
    %c0_5 = arith.constant 0 : index
    %c0_6 = arith.constant 0 : index
    %6 = vector.load %arg2[%c0_5, %c0_6] : memref<16x128xf32, #tpu.memory_space<vmem>>, vector<16x128xf32>
    %7 = arith.addf %5, %6 : vector<16x128xf32>
    %cst_7 = arith.constant dense<0.000000e+00> : vector<16xf32>
    %8 = vector.multi_reduction <add>, %7, %cst_7 [1] : vector<16x128xf32> to vector<16xf32>
    %9 = vector.shape_cast %8 : vector<16xf32> to vector<16x1xf32>
    %cst_8 = arith.constant 3.125000e-02 : f32
    %10 = vector.broadcast %cst_8 : f32 to vector<16x1xf32>
    %11 = arith.mulf %9, %10 : vector<16x1xf32>
    %12 = vector.broadcast %11 : vector<16x1xf32> to vector<16x128xf32>
    %13 = arith.subf %7, %12 : vector<16x128xf32>
    %14 = tpu.iota {dimensions = array<i32: 1>} : vector<1x128xi32>
    %c32_i32 = arith.constant 32 : i32
    %15 = vector.broadcast %c32_i32 : i32 to vector<1x128xi32>
    %16 = arith.cmpi slt, %14, %15 : vector<1x128xi32>
    %cst_9 = arith.constant 0.000000e+00 : f32
    %17 = vector.shape_cast %16 : vector<1x128xi1> to vector<1x128xi1>
    %18 = vector.broadcast %17 : vector<1x128xi1> to vector<16x128xi1>
    %19 = vector.broadcast %cst_9 : f32 to vector<16x128xf32>
    %20 = arith.select %18, %13, %19 : vector<16x128xi1>, vector<16x128xf32>
    %21 = arith.mulf %20, %20 : vector<16x128xf32>
    %cst_10 = arith.constant dense<0.000000e+00> : vector<16xf32>
    %22 = vector.multi_reduction <add>, %21, %cst_10 [1] : vector<16x128xf32> to vector<16xf32>
    %23 = vector.shape_cast %22 : vector<16xf32> to vector<16x1xf32>
    %cst_11 = arith.constant 3.125000e-02 : f32
    %24 = vector.broadcast %cst_11 : f32 to vector<16x1xf32>
    %25 = arith.mulf %23, %24 : vector<16x1xf32>
    %cst_12 = arith.constant 9.99999996E-13 : f32
    %26 = vector.broadcast %cst_12 : f32 to vector<16x1xf32>
    %27 = arith.addf %25, %26 : vector<16x1xf32>
    %28 = math.rsqrt %27 : vector<16x1xf32>
    %29 = vector.broadcast %28 : vector<16x1xf32> to vector<16x128xf32>
    %30 = arith.mulf %20, %29 : vector<16x128xf32>
    %c0_13 = arith.constant 0 : index
    %c0_14 = arith.constant 0 : index
    %31 = vector.load %arg5[%c0_13, %c0_14] : memref<1x128xf32, #tpu.memory_space<vmem>>, vector<1x128xf32>
    %32 = vector.broadcast %31 : vector<1x128xf32> to vector<16x128xf32>
    %33 = arith.mulf %30, %32 : vector<16x128xf32>
    %c0_15 = arith.constant 0 : index
    %c0_16 = arith.constant 0 : index
    %34 = vector.load %arg6[%c0_15, %c0_16] : memref<1x128xf32, #tpu.memory_space<vmem>>, vector<1x128xf32>
    %35 = vector.broadcast %34 : vector<1x128xf32> to vector<16x128xf32>
    %36 = arith.addf %33, %35 : vector<16x128xf32>
    %c0_17 = arith.constant 0 : index
    %c0_18 = arith.constant 0 : index
    %37 = vector.load %arg7[%c0_17, %c0_18] : memref<16x128xf32, #tpu.memory_space<vmem>>, vector<16x128xf32>
    tpu.vector_store %arg7[%c0_17, %c0_18], %36 {strides = array<i32>} : memref<16x128xf32, #tpu.memory_space<vmem>>, vector<16x128xf32>,
    return
  }
  func.func @transform_0(%arg0: i32) -> (i32, i32) {
    %c0_i32 = arith.constant 0 : i32
    %c0_i32_0 = arith.constant 0 : i32
    return %arg0, %c0_i32 : i32, i32
  }
  func.func @transform_1(%arg0: i32) -> (i32, i32) {
    %c0_i32 = arith.constant 0 : i32
    %c0_i32_0 = arith.constant 0 : i32
    return %arg0, %c0_i32 : i32, i32
  }
  func.func @transform_2(%arg0: i32) -> (i32, i32) {
    %c0_i32 = arith.constant 0 : i32
    %c0_i32_0 = arith.constant 0 : i32
    %c0_i32_1 = arith.constant 0 : i32
    return %c0_i32, %c0_i32_0 : i32, i32
  }
  func.func @transform_3(%arg0: i32) -> (i32, i32) {
    %c0_i32 = arith.constant 0 : i32
    %c0_i32_0 = arith.constant 0 : i32
    %c0_i32_1 = arith.constant 0 : i32
    return %c0_i32, %c0_i32_0 : i32, i32
  }
  func.func @transform_4(%arg0: i32) -> (i32, i32) {
    %c0_i32 = arith.constant 0 : i32
    %c0_i32_0 = arith.constant 0 : i32
    %c0_i32_1 = arith.constant 0 : i32
    return %c0_i32, %c0_i32_0 : i32, i32
  }
  func.func @transform_5(%arg0: i32) -> (i32, i32) {
    %c0_i32 = arith.constant 0 : i32
    %c0_i32_0 = arith.constant 0 : i32
    %c0_i32_1 = arith.constant 0 : i32
    return %c0_i32, %c0_i32_0 : i32, i32
  }
  func.func @transform_6(%arg0: i32) -> (i32, i32) {
    %c0_i32 = arith.constant 0 : i32
    %c0_i32_0 = arith.constant 0 : i32
    return %arg0, %c0_i32 : i32, i32
  }
}

</mosaic_0001>

<bundles_post_ra>
// kernel: tpu_custom_call.1
= control target key start
LH: loop header
LB: loop body
LE: loop exit
PB: predicated region body
PF: predicated region fallthrough
CT: control target
= control target key end

     0   :  { %11 = vsyncpa [#allocation3], 0  ;;  %s462_s0 = inlined_call_operand.hbm [shape: f32[16,128], index: 0, kind: input, shape index: {}]   ;;  %s463_s1 = inlined_call_operand.hbm [shape: f32[16,128], index: 1, kind: input, shape index: {}]   ;;  %s464_s2 = inlined_call_operand.hbm [shape: f32[128,128], index: 2, kind: input, shape index: {}]   ;;  %s465_s3 = inlined_call_operand.vmem [shape: f32[1,128], index: 3, kind: input, shape index: {}]   ;;  %s466_s4 = inlined_call_operand.vmem [shape: f32[1,128], index: 4, kind: input, shape index: {}]   ;;  %s467_s5 = inlined_call_operand.vmem [shape: f32[1,128], index: 5, kind: input, shape index: {}]   ;;  %s468_s6 = inlined_call_operand.hbm [shape: f32[16,128], index: 6, kind: output, shape index: {}]  }
   0x1   :  { %12 = vsyncpa [#allocation6], 0 }
   0x2   :  { %13 = vsyncpa [#allocation4], 0  ;;  %s388_s21 = smov [#allocation5]   ;;  %s389_s23 = smov [#allocation2]  }
   0x3   :  { %s31_s22 = sshll.u32 %s388_s21, 4  ;;  %s19_s24 = sshll.u32 %s389_s23, 4  ;;  %s32_s22 = int_to_ptr.vmem [resolvable:$true] %s31_s22  ;;  %s20_s24 = int_to_ptr.vmem [resolvable:$true] %s19_s24 }
   0x4   :  { %s310_s25 = scalar_lea.vmem %s32_s22, 256  ;;  %p315_p1 = scmp.lt.s32.totalorder %s32_s22, %s32_s22 }
   0x5   :  { %p311_p0 = scmp.ne.s32.totalorder %s32_s22, %s310_s25  ;;  %p316_p2 = scmp.lt.s32.totalorder %s310_s25, %s310_s25 }
   0x7   :  { %p317_p3 = por %p316_p2, %p315_p1 }
   0x9   :  { %p318_p4 = pnand %p317_p3, %p311_p0 }
   0xb   :  { %321 = shalt.err (!%p318_p4)
}
   0xc   :  { %s390_s26 = smov 128   ;;  %s391_s27 = smov 8  }
   0xd   :  { %37 = dma.hbm_to_vmem [thread:$0]  %s463_s1, 256, %s32_s22, [#allocation6], %s390_s26, %s390_s26, %s391_s27  }
   0xe   :  { %s330_s30 = scalar_lea.vmem %s20_s24, 256  ;;  %p335_p6 = scmp.lt.s32.totalorder %s20_s24, %s20_s24 }
   0xf   :  { %p331_p5 = scmp.ne.s32.totalorder %s20_s24, %s330_s30  ;;  %p336_p7 = scmp.lt.s32.totalorder %s330_s30, %s330_s30 }
  0x11   :  { %p337_p8 = por %p336_p7, %p335_p6 }
  0x13   :  { %p338_p9 = pnand %p337_p8, %p331_p5 }
  0x15   :  { %341 = shalt.err (!%p338_p9)
}
  0x16   :  { %25 = dma.hbm_to_vmem [thread:$0]  %s462_s0, 256, %s20_s24, [#allocation3], %s390_s26, %s390_s26, %s391_s27  }
  0x17   :  { %s392_s9 = smov [#allocation7]  }
  0x18   :  { %s43_s10 = sshll.u32 %s392_s9, 4  ;;  %s44_s10 = int_to_ptr.vmem [resolvable:$true] %s43_s10 }
  0x19   :  { %s350_s11 = scalar_lea.vmem %s44_s10, 2048  ;;  %p355_p11 = scmp.lt.s32.totalorder %s44_s10, %s44_s10 }
  0x1a   :  { %p351_p10 = scmp.ne.s32.totalorder %s44_s10, %s350_s11  ;;  %p356_p12 = scmp.lt.s32.totalorder %s350_s11, %s350_s11 }
  0x1c   :  { %p357_p13 = por %p356_p12, %p355_p11 }
  0x1e   :  { %p358_p0 = pnand %p357_p13, %p351_p10 }
  0x20   :  { %361 = shalt.err (!%p358_p0)
}
  0x21   :  { %49 = dma.hbm_to_vmem [thread:$0]  %s464_s2, 2048, %s44_s10, [#allocation6], %s390_s26, %s390_s26, %s391_s27  }
  0x22   :  { %382 = dma.done.wait [#allocation3], 256  }
  0x23   :  { %383 = vsyncadd [#allocation3], 4294967040 }
  0x24   :  { %384 = dma.done.wait [#allocation6], 2304  }
  0x25   :  { %385 = vsyncadd [#allocation6], 4294964992  ;;  %v82_v0 = vld [vmem:[#allocation7 + $0x78] sm:$0xff]  ;;  %v81_v1 = vld [vmem:[#allocation7 + $0x70] sm:$0xff]  ;;  %v177_v27 = vlaneseq  ;;  %s393_s16 = smov [#allocation8]  }
  0x26   :  { %257 = vmatprep.subr.mxu0 %v82_v0  ;;  %v80_v2 = vld [vmem:[#allocation7 + $0x68] sm:$0xff]  ;;  %v79_v3 = vld [vmem:[#allocation7 + $0x60] sm:$0xff]  ;;  %v78_v5 = vld [vmem:[#allocation7 + $0x58] sm:$0xff]  ;;  %s223_s17 = sshll.u32 %s393_s16, 4  ;;  %s224_s17 = int_to_ptr.vmem [resolvable:$true] %s223_s17 }
  0x27   :  { %258 = vmatpush3.msra.mxu0 %v82_v0  ;;  %v65_v4 = vld [vmem:[#allocation2] sm:$0xff]  ;;  %v77_v6 = vld [vmem:[#allocation7 + $0x50] sm:$0xff]  ;;  %v76_v7 = vld [vmem:[#allocation7 + $0x48] sm:$0xff]  ;;  %v178_v28 = vand.u32 127, %v177_v27  ;;  %s362_s18 = scalar_lea.vmem %s224_s17, 256  ;;  %p367_p2 = scmp.lt.s32.totalorder %s224_s17, %s224_s17 }
  0x28   :  { %259 = vmatprep.subr.mxu0 %v81_v1  ;;  %289 = vmatprep.mubr.f32.mxu0 %v65_v4  ;;  %v75_v8 = vld [vmem:[#allocation7 + $0x40] sm:$0xff]  ;;  %v74_v9 = vld [vmem:[#allocation7 + $0x38] sm:$0xff]  ;;  %v73_v10 = vld [vmem:[#allocation7 + $0x30] sm:$0xff]  ;;  %p363_p1 = scmp.ne.s32.totalorder %s224_s17, %s362_s18  ;;  %p368_p3 = scmp.lt.s32.totalorder %s362_s18, %s362_s18 }
  0x29   :  { %260 = vmatpush3.msra.mxu0 %v81_v1  ;;  %v72_v11 = vld [vmem:[#allocation7 + $0x28] sm:$0xff]  ;;  %v71_v12 = vld [vmem:[#allocation7 + $0x20] sm:$0xff]  ;;  %v70_v13 = vld [vmem:[#allocation7 + $0x18] sm:$0xff]  ;;  %vm179_vm0 = vcmp.lt.s32.totalorder %v178_v28, 32 }
  0x2a   :  { %261 = vmatprep.subr.mxu0 %v80_v2  ;;  %v69_v14 = vld [vmem:[#allocation7 + $0x10] sm:$0xff]  ;;  %v68_v15 = vld [vmem:[#allocation7 + $0x8] sm:$0xff]  ;;  %v67_v16 = vld [vmem:[#allocation7] sm:$0xff]  ;;  %p369_p4 = por %p368_p3, %p367_p2 }
  0x2b   :  { %262 = vmatpush3.msra.mxu0 %v80_v2  ;;  %v66_v17 = vld [vmem:[#allocation2 + $0x8] sm:$0xff]  ;;  %v236_v19 = vld [vmem:[%s465_s3] ss:$0 sm:$0xff]  ;;  %v165_v21 = vld [vmem:[#allocation5] sm:$0xff] }
  0x2c   :  { %263 = vmatprep.subr.mxu0 %v79_v3  ;;  %v166_v25 = vld [vmem:[#allocation5 + $0x8] sm:$0xff]  ;;  %v237_v46 = vld [vmem:[%s466_s4] ss:$0 sm:$0xff]  ;;  %p370_p5 = pnand %p369_p4, %p363_p1 }
  0x2d   :  { %264 = vmatpush3.msra.mxu0 %v79_v3  ;;  %v238_v48 = vld [vmem:[%s467_s5] ss:$0 sm:$0xff] }
  0x2e   :  { %265 = vmatprep.subr.mxu0 %v78_v5 }
  0x2f   :  { %266 = vmatpush3.msra.mxu0 %v78_v5 }
  0x30   :  { %267 = vmatprep.subr.mxu0 %v77_v6 }
  0x31   :  { %268 = vmatpush3.msra.mxu0 %v77_v6 }
  0x32   :  { %269 = vmatprep.subr.mxu0 %v76_v7 }
  0x33   :  { %270 = vmatpush3.msra.mxu0 %v76_v7 }
  0x34   :  { %271 = vmatprep.subr.mxu0 %v75_v8 }
  0x35   :  { %272 = vmatpush3.msra.mxu0 %v75_v8 }
  0x36   :  { %273 = vmatprep.subr.mxu0 %v74_v9 }
  0x37   :  { %274 = vmatpush3.msra.mxu0 %v74_v9 }
  0x38   :  { %275 = vmatprep.subr.mxu0 %v73_v10 }
  0x39   :  { %276 = vmatpush3.msra.mxu0 %v73_v10 }
  0x3a   :  { %277 = vmatprep.subr.mxu0 %v72_v11 }
  0x3b   :  { %278 = vmatpush3.msra.mxu0 %v72_v11 }
  0x3c   :  { %279 = vmatprep.subr.mxu0 %v71_v12 }
  0x3d   :  { %280 = vmatpush3.msra.mxu0 %v71_v12 }
  0x3e   :  { %281 = vmatprep.subr.mxu0 %v70_v13 }
  0x3f   :  { %282 = vmatpush3.msra.mxu0 %v70_v13 }
  0x40   :  { %283 = vmatprep.subr.mxu0 %v69_v14 }
  0x41   :  { %284 = vmatpush3.msra.mxu0 %v69_v14 }
  0x42   :  { %285 = vmatprep.subr.mxu0 %v68_v15 }
  0x43   :  { %286 = vmatpush3.msra.mxu0 %v68_v15 }
  0x44   :  { %287 = vmatprep.subr.mxu0 %v67_v16 }
  0x45   :  { %288 = vmatpush3.msra.mxu0 %v67_v16 }
  0x46   :  { %290 = vmatmul.mubr.f32.vlgmr.msra.gmra.mxu0 %v66_v17 }
 0x106   :  { %v291_v18 = vpop.f32.mrf.mxu0 }
 0x107   :  { %v162_v23 = vadd.f32 %v291_v18, %v236_v19 }
 0x108   :  { %v156_v20 = vpop.f32.mrf.mxu0 }
 0x109   :  { %v157_v22 = vadd.f32 %v236_v19, %v156_v20  ;;  %v168_v26 = vadd.f32 %v166_v25, %v162_v23 }
 0x10b   :  { %v167_v24 = vadd.f32 %v165_v21, %v157_v22 }
 0x10d   :  { %169 = vadd.xlane.f32.xlu0 %v167_v24 }
 0x111   :  { %171 = vadd.xlane.f32.xlu0 %v168_v26 }
 0x196   :  { %v170_v29 = vpop.xlane.xlu0 %169 }
 0x197   :  { %v173_v30 = vmul.f32 0.03125, %v170_v29 }
 0x199   :  { %v175_v31 = vsub.f32 %v167_v24, %v173_v30 }
 0x19a   :  { %v172_v32 = vpop.xlane.xlu0 %171 }
 0x19b   :  { %v174_v33 = vmul.f32 0.03125, %v172_v32  ;;  %v182_v34 = vsel %vm179_vm0, %v175_v31, 0.0 }
 0x19c   :  { %v184_v35 = vmul.f32 %v182_v34, %v182_v34 }
 0x19d   :  { %v176_v36 = vsub.f32 %v168_v26, %v174_v33 }
 0x19e   :  { %186 = vadd.xlane.f32.xlu1 %v184_v35 }
 0x19f   :  { %v183_v37 = vsel %vm179_vm0, %v176_v36, 0.0 }
 0x1a0   :  { %v185_v38 = vmul.f32 %v183_v37, %v183_v37 }
 0x1a2   :  { %188 = vadd.xlane.f32.xlu1 %v185_v38 }
 0x227   :  { %v187_v39 = vpop.xlane.xlu1 %186 }
 0x228   :  { %v190_v40 = vmul.f32 0.03125, %v187_v39 }
 0x22a   :  { %v192_v41 = vadd.f32 1e-12, %v190_v40 }
 0x22b   :  { %v189_v42 = vpop.xlane.xlu1 %188 }
 0x22c   :  { %298 = vrsqrt.f32 %v192_v41  ;;  %v191_v43 = vmul.f32 0.03125, %v189_v42 }
 0x22e   :  { %v193_v44 = vadd.f32 1e-12, %v191_v43 }
 0x230   :  { %300 = vrsqrt.f32 %v193_v44 }
 0x239   :  { %v299_v45 = vpop.eup %298 }
 0x23a   :  { %v196_v47 = vmul.f32 %v299_v45, %v182_v34 }
 0x23c   :  { %v205_v49 = vmul.f32 %v237_v46, %v196_v47 }
 0x23d   :  { %v301_v50 = vpop.eup %300 }
 0x23e   :  { %v197_v51 = vmul.f32 %v301_v50, %v183_v37  ;;  %v214_v52 = vadd.f32 %v238_v48, %v205_v49 }
 0x240   :  { %v206_v53 = vmul.f32 %v237_v46, %v197_v51  ;;  %216 = vst [vmem:[#allocation8] sm:$0xff] %v214_v52 }
 0x242   :  { %v215_v54 = vadd.f32 %v238_v48, %v206_v53 }
 0x244   :  { %217 = vst [vmem:[#allocation8 + $0x8] sm:$0xff] %v215_v54 }
 0x245   :  { %373 = shalt.err (!%p370_p5)
}
 0x246   :  { %229 = dma.vmem_to_hbm [thread:$0]  %s224_s17, 256, %s468_s6, [#allocation4], %s390_s26, %s390_s26, %s391_s27  }
 0x247   :  { %386 = dma.done.wait [#allocation4], 256  }
 0x248   :  { %387 = vsyncadd [#allocation4], 4294967040 }
 0x249   :  { %233 = vsyncpa [#allocation3], 1 }
 0x24a   :  { %234 = vsyncpa [#allocation6], 1 }
 0x24b   :  { %235 = vsyncpa [#allocation4], 1 }

// kernel: tpu_custom_call.1
= control target key start
LH: loop header
LB: loop body
LE: loop exit
PB: predicated region body
PF: predicated region fallthrough
CT: control target
= control target key end

     0   :  { %11 = vsyncpa [#allocation3], 0  ;;  %s462_s0 = inlined_call_operand.hbm [shape: f32[16,128], index: 0, kind: input, shape index: {}]   ;;  %s463_s1 = inlined_call_operand.hbm [shape: f32[16,128], index: 1, kind: input, shape index: {}]   ;;  %s464_s2 = inlined_call_operand.hbm [shape: f32[128,128], index: 2, kind: input, shape index: {}]   ;;  %s465_s3 = inlined_call_operand.vmem [shape: f32[1,128], index: 3, kind: input, shape index: {}]   ;;  %s466_s4 = inlined_call_operand.vmem [shape: f32[1,128], index: 4, kind: input, shape index: {}]   ;;  %s467_s5 = inlined_call_operand.vmem [shape: f32[1,128], index: 5, kind: input, shape index: {}]   ;;  %s468_s6 = inlined_call_operand.hbm [shape: f32[16,128], index: 6, kind: output, shape index: {}]  }
   0x1   :  { %12 = vsyncpa [#allocation6], 0 }
   0x2   :  { %13 = vsyncpa [#allocation4], 0  ;;  %s388_s21 = smov [#allocation5]   ;;  %s389_s23 = smov [#allocation2]  }
   0x3   :  { %s31_s22 = sshll.u32 %s388_s21, 4  ;;  %s19_s24 = sshll.u32 %s389_s23, 4  ;;  %s32_s22 = int_to_ptr.vmem [resolvable:$true] %s31_s22  ;;  %s20_s24 = int_to_ptr.vmem [resolvable:$true] %s19_s24 }
   0x4   :  { %s310_s25 = scalar_lea.vmem %s32_s22, 256  ;;  %p315_p1 = scmp.lt.s32.totalorder %s32_s22, %s32_s22 }
   0x5   :  { %p311_p0 = scmp.ne.s32.totalorder %s32_s22, %s310_s25  ;;  %p316_p2 = scmp.lt.s32.totalorder %s310_s25, %s310_s25 }
   0x7   :  { %p317_p3 = por %p316_p2, %p315_p1 }
   0x9   :  { %p318_p4 = pnand %p317_p3, %p311_p0 }
   0xb   :  { %321 = shalt.err (!%p318_p4)
}
   0xc   :  { %s390_s26 = smov 128   ;;  %s391_s27 = smov 8  }
   0xd   :  { %37 = dma.hbm_to_vmem [thread:$0]  %s463_s1, 256, %s32_s22, [#allocation6], %s390_s26, %s390_s26, %s391_s27  }
   0xe   :  { %s330_s30 = scalar_lea.vmem %s20_s24, 256  ;;  %p335_p6 = scmp.lt.s32.totalorder %s20_s24, %s20_s24 }
   0xf   :  { %p331_p5 = scmp.ne.s32.totalorder %s20_s24, %s330_s30  ;;  %p336_p7 = scmp.lt.s32.totalorder %s330_s30, %s330_s30 }
  0x11   :  { %p337_p8 = por %p336_p7, %p335_p6 }
  0x13   :  { %p338_p9 = pnand %p337_p8, %p331_p5 }
  0x15   :  { %341 = shalt.err (!%p338_p9)
}
  0x16   :  { %25 = dma.hbm_to_vmem [thread:$0]  %s462_s0, 256, %s20_s24, [#allocation3], %s390_s26, %s390_s26, %s391_s27  }
  0x17   :  { %s392_s9 = smov [#allocation7]  }
  0x18   :  { %s43_s10 = sshll.u32 %s392_s9, 4  ;;  %s44_s10 = int_to_ptr.vmem [resolvable:$true] %s43_s10 }
  0x19   :  { %s350_s11 = scalar_lea.vmem %s44_s10, 2048  ;;  %p355_p11 = scmp.lt.s32.totalorder %s44_s10, %s44_s10 }
  0x1a   :  { %p351_p10 = scmp.ne.s32.totalorder %s44_s10, %s350_s11  ;;  %p356_p12 = scmp.lt.s32.totalorder %s350_s11, %s350_s11 }
  0x1c   :  { %p357_p13 = por %p356_p12, %p355_p11 }
  0x1e   :  { %p358_p0 = pnand %p357_p13, %p351_p10 }
  0x20   :  { %361 = shalt.err (!%p358_p0)
}
  0x21   :  { %49 = dma.hbm_to_vmem [thread:$0]  %s464_s2, 2048, %s44_s10, [#allocation6], %s390_s26, %s390_s26, %s391_s27  }
  0x22   :  { %382 = dma.done.wait [#allocation3], 256  }
  0x23   :  { %383 = vsyncadd [#allocation3], 4294967040 }
  0x24   :  { %384 = dma.done.wait [#allocation6], 2304  }
  0x25   :  { %385 = vsyncadd [#allocation6], 4294964992  ;;  %v82_v0 = vld [vmem:[#allocation7 + $0x78] sm:$0xff]  ;;  %v81_v1 = vld [vmem:[#allocation7 + $0x70] sm:$0xff]  ;;  %v177_v27 = vlaneseq  ;;  %s393_s16 = smov [#allocation8]  }
  0x26   :  { %257 = vmatprep.subr.mxu0 %v82_v0  ;;  %v80_v2 = vld [vmem:[#allocation7 + $0x68] sm:$0xff]  ;;  %v79_v3 = vld [vmem:[#allocation7 + $0x60] sm:$0xff]  ;;  %v78_v5 = vld [vmem:[#allocation7 + $0x58] sm:$0xff]  ;;  %s223_s17 = sshll.u32 %s393_s16, 4  ;;  %s224_s17 = int_to_ptr.vmem [resolvable:$true] %s223_s17 }
  0x27   :  { %258 = vmatpush3.msra.mxu0 %v82_v0  ;;  %v65_v4 = vld [vmem:[#allocation2] sm:$0xff]  ;;  %v77_v6 = vld [vmem:[#allocation7 + $0x50] sm:$0xff]  ;;  %v76_v7 = vld [vmem:[#allocation7 + $0x48] sm:$0xff]  ;;  %v178_v28 = vand.u32 127, %v177_v27  ;;  %s362_s18 = scalar_lea.vmem %s224_s17, 256  ;;  %p367_p2 = scmp.lt.s32.totalorder %s224_s17, %s224_s17 }
  0x28   :  { %259 = vmatprep.subr.mxu0 %v81_v1  ;;  %289 = vmatprep.mubr.f32.mxu0 %v65_v4  ;;  %v75_v8 = vld [vmem:[#allocation7 + $0x40] sm:$0xff]  ;;  %v74_v9 = vld [vmem:[#allocation7 + $0x38] sm:$0xff]  ;;  %v73_v10 = vld [vmem:[#allocation7 + $0x30] sm:$0xff]  ;;  %p363_p1 = scmp.ne.s32.totalorder %s224_s17, %s362_s18  ;;  %p368_p3 = scmp.lt.s32.totalorder %s362_s18, %s362_s18 }
  0x29   :  { %260 = vmatpush3.msra.mxu0 %v81_v1  ;;  %v72_v11 = vld [vmem:[#allocation7 + $0x28] sm:$0xff]  ;;  %v71_v12 = vld [vmem:[#allocation7 + $0x20] sm:$0xff]  ;;  %v70_v13 = vld [vmem:[#allocation7 + $0x18] sm:$0xff]  ;;  %vm179_vm0 = vcmp.lt.s32.totalorder %v178_v28, 32 }
  0x2a   :  { %261 = vmatprep.subr.mxu0 %v80_v2  ;;  %v69_v14 = vld [vmem:[#allocation7 + $0x10] sm:$0xff]  ;;  %v68_v15 = vld [vmem:[#allocation7 + $0x8] sm:$0xff]  ;;  %v67_v16 = vld [vmem:[#allocation7] sm:$0xff]  ;;  %p369_p4 = por %p368_p3, %p367_p2 }
  0x2b   :  { %262 = vmatpush3.msra.mxu0 %v80_v2  ;;  %v66_v17 = vld [vmem:[#allocation2 + $0x8] sm:$0xff]  ;;  %v236_v19 = vld [vmem:[%s465_s3] ss:$0 sm:$0xff]  ;;  %v165_v21 = vld [vmem:[#allocation5] sm:$0xff] }
  0x2c   :  { %263 = vmatprep.subr.mxu0 %v79_v3  ;;  %v166_v25 = vld [vmem:[#allocation5 + $0x8] sm:$0xff]  ;;  %v237_v46 = vld [vmem:[%s466_s4] ss:$0 sm:$0xff]  ;;  %p370_p5 = pnand %p369_p4, %p363_p1 }
  0x2d   :  { %264 = vmatpush3.msra.mxu0 %v79_v3  ;;  %v238_v48 = vld [vmem:[%s467_s5] ss:$0 sm:$0xff] }
  0x2e   :  { %265 = vmatprep.subr.mxu0 %v78_v5 }
  0x2f   :  { %266 = vmatpush3.msra.mxu0 %v78_v5 }
  0x30   :  { %267 = vmatprep.subr.mxu0 %v77_v6 }
  0x31   :  { %268 = vmatpush3.msra.mxu0 %v77_v6 }
  0x32   :  { %269 = vmatprep.subr.mxu0 %v76_v7 }
  0x33   :  { %270 = vmatpush3.msra.mxu0 %v76_v7 }
  0x34   :  { %271 = vmatprep.subr.mxu0 %v75_v8 }
  0x35   :  { %272 = vmatpush3.msra.mxu0 %v75_v8 }
  0x36   :  { %273 = vmatprep.subr.mxu0 %v74_v9 }
  0x37   :  { %274 = vmatpush3.msra.mxu0 %v74_v9 }
  0x38   :  { %275 = vmatprep.subr.mxu0 %v73_v10 }
  0x39   :  { %276 = vmatpush3.msra.mxu0 %v73_v10 }
  0x3a   :  { %277 = vmatprep.subr.mxu0 %v72_v11 }
  0x3b   :  { %278 = vmatpush3.msra.mxu0 %v72_v11 }
  0x3c   :  { %279 = vmatprep.subr.mxu0 %v71_v12 }
  0x3d   :  { %280 = vmatpush3.msra.mxu0 %v71_v12 }
  0x3e   :  { %281 = vmatprep.subr.mxu0 %v70_v13 }
  0x3f   :  { %282 = vmatpush3.msra.mxu0 %v70_v13 }
  0x40   :  { %283 = vmatprep.subr.mxu0 %v69_v14 }
  0x41   :  { %284 = vmatpush3.msra.mxu0 %v69_v14 }
  0x42   :  { %285 = vmatprep.subr.mxu0 %v68_v15 }
  0x43   :  { %286 = vmatpush3.msra.mxu0 %v68_v15 }
  0x44   :  { %287 = vmatprep.subr.mxu0 %v67_v16 }
  0x45   :  { %288 = vmatpush3.msra.mxu0 %v67_v16 }
  0x46   :  { %290 = vmatmul.mubr.f32.vlgmr.msra.gmra.mxu0 %v66_v17 }
 0x106   :  { %v291_v18 = vpop.f32.mrf.mxu0 }
 0x107   :  { %v162_v23 = vadd.f32 %v291_v18, %v236_v19 }
 0x108   :  { %v156_v20 = vpop.f32.mrf.mxu0 }
 0x109   :  { %v157_v22 = vadd.f32 %v236_v19, %v156_v20  ;;  %v168_v26 = vadd.f32 %v166_v25, %v162_v23 }
 0x10b   :  { %v167_v24 = vadd.f32 %v165_v21, %v157_v22 }
 0x10d   :  { %169 = vadd.xlane.f32.xlu0 %v167_v24 }
 0x111   :  { %171 = vadd.xlane.f32.xlu0 %v168_v26 }
 0x196   :  { %v170_v29 = vpop.xlane.xlu0 %169 }
 0x197   :  { %v173_v30 = vmul.f32 0.03125, %v170_v29 }
 0x199   :  { %v175_v31 = vsub.f32 %v167_v24, %v173_v30 }
 0x19a   :  { %v172_v32 = vpop.xlane.xlu0 %171 }
 0x19b   :  { %v174_v33 = vmul.f32 0.03125, %v172_v32  ;;  %v182_v34 = vsel %vm179_vm0, %v175_v31, 0.0 }
 0x19c   :  { %v184_v35 = vmul.f32 %v182_v34, %v182_v34 }
 0x19d   :  { %v176_v36 = vsub.f32 %v168_v26, %v174_v33 }
 0x19e   :  { %186 = vadd.xlane.f32.xlu1 %v184_v35 }
 0x19f   :  { %v183_v37 = vsel %vm179_vm0, %v176_v36, 0.0 }
 0x1a0   :  { %v185_v38 = vmul.f32 %v183_v37, %v183_v37 }
 0x1a2   :  { %188 = vadd.xlane.f32.xlu1 %v185_v38 }
 0x227   :  { %v187_v39 = vpop.xlane.xlu1 %186 }
 0x228   :  { %v190_v40 = vmul.f32 0.03125, %v187_v39 }
 0x22a   :  { %v192_v41 = vadd.f32 1e-12, %v190_v40 }
 0x22b   :  { %v189_v42 = vpop.xlane.xlu1 %188 }
 0x22c   :  { %298 = vrsqrt.f32 %v192_v41  ;;  %v191_v43 = vmul.f32 0.03125, %v189_v42 }
 0x22e   :  { %v193_v44 = vadd.f32 1e-12, %v191_v43 }
 0x230   :  { %300 = vrsqrt.f32 %v193_v44 }
 0x239   :  { %v299_v45 = vpop.eup %298 }
 0x23a   :  { %v196_v47 = vmul.f32 %v299_v45, %v182_v34 }
 0x23c   :  { %v205_v49 = vmul.f32 %v237_v46, %v196_v47 }
 0x23d   :  { %v301_v50 = vpop.eup %300 }
 0x23e   :  { %v197_v51 = vmul.f32 %v301_v50, %v183_v37  ;;  %v214_v52 = vadd.f32 %v238_v48, %v205_v49 }
 0x240   :  { %v206_v53 = vmul.f32 %v237_v46, %v197_v51  ;;  %216 = vst [vmem:[#allocation8] sm:$0xff] %v214_v52 }
 0x242   :  { %v215_v54 = vadd.f32 %v238_v48, %v206_v53 }
 0x244   :  { %217 = vst [vmem:[#allocation8 + $0x8] sm:$0xff] %v215_v54 }
 0x245   :  { %373 = shalt.err (!%p370_p5)
}
 0x246   :  { %229 = dma.vmem_to_hbm [thread:$0]  %s224_s17, 256, %s468_s6, [#allocation4], %s390_s26, %s390_s26, %s391_s27  }
 0x247   :  { %386 = dma.done.wait [#allocation4], 256  }
 0x248   :  { %387 = vsyncadd [#allocation4], 4294967040 }
 0x249   :  { %233 = vsyncpa [#allocation3], 1 }
 0x24a   :  { %234 = vsyncpa [#allocation6], 1 }
 0x24b   :  { %235 = vsyncpa [#allocation4], 1 }

</bundles_post_ra>
